<compile_context>
chip_gen: v7x
topology: tpu7x:2x2x1
jax: 0.10.0
libtpu: 0.0.40
codegen_flags: <defaults>
</compile_context>

<pallas_src>
import jax
import jax.numpy as jnp
from jax.experimental import pallas as pl
from jax.experimental.pallas import tpu as pltpu


def _se_kernel(x_ref, w1p_ref, w2e_ref, o_ref):
    # x_ref:   (tb, C*L)  input-dtype block (lane-dense)
    # w1p_ref: (C*L, Cr)  f32, pooling (1/L) folded into transposed fc1 weight
    # w2e_ref: (Cr, C*L)  f32, L-repeat folded into transposed fc2 weight
    x = x_ref[...]                                                      # (tb, C*L)

    # Fused squeeze + fc1:  (tb, C*L) @ (C*L, Cr) == mean_L(x) @ w1.T
    h = jnp.dot(x, w1p_ref[...], preferred_element_type=jnp.float32)   # (tb, Cr)
    h = jnp.maximum(h, 0.0)                                             # ReLU

    # fc2 + sigmoid with the L-broadcast folded into the weight:
    # sigmoid(h @ repeat(w2.T, L)) == repeat(sigmoid(h @ w2.T), L)
    gate = jax.nn.sigmoid(
        jnp.dot(h, w2e_ref[...], preferred_element_type=jnp.float32)   # (tb, C*L)
    )

    # Scale (cast is a no-op for f32 input).
    o_ref[...] = (x * gate.astype(x.dtype)).astype(o_ref.dtype)


def se_layer_1d(x, w1, w2, *, block_rows=None, vmem_limit_bytes=32 * 1024 * 1024):
    """SE layer forward.

    x:  (B, C, L)  input
    w1: (Cr, C)    Conv1d(C, Cr, k=1, bias=False) weight, kernel dim squeezed
    w2: (C, Cr)    Conv1d(Cr, C, k=1, bias=False) weight, kernel dim squeezed
    Returns (B, C, L) of x.dtype.
    """
    B, C, L = x.shape
    Cr = w1.shape[0]
    CL = C * L

    # ---- wrapper-side layout plumbing (free / constant-foldable under jit) ----
    x2d = x.reshape(B, CL)                                        # lane-dense view
    w1p = jnp.repeat(w1.T.astype(jnp.float32) / L, L, axis=0)     # (C*L, Cr)
    w2e = jnp.repeat(w2.T.astype(jnp.float32), L, axis=1)         # (Cr, C*L)

    # ---- pick the batch tile from a VMEM budget -------------------------------
    itemsize = jnp.dtype(x.dtype).itemsize
    # Per row: in + out double-buffered (4*itemsize) plus the f32 gate intermediate.
    per_row_bytes = (4 * itemsize + 4) * CL
    # Resident weights (double-buffered, lane/sublane-padded): w1p lanes pad
    # Cr->128, w2e sublanes pad Cr->8.
    weight_bytes = 2 * 4 * (CL * max(Cr, 128) + max(Cr, 8) * CL)
    budget = vmem_limit_bytes - weight_bytes - (1 << 20)          # ~1 MiB headroom

    if block_rows is None:
        max_rows = max(8, budget // per_row_bytes)
        if max_rows >= B:
            # Whole batch fits: split into 2 grid steps for v7x's two
            # TensorCores when the batch is large enough to keep blocks full.
            if B >= 256 and B % 2 == 0 and (B // 2) % 8 == 0:
                tb = B // 2
            else:
                tb = B
        else:
            # Prefer multiples of 128 (fills the MXU M dim, amortizes the
            # ~0.35 us per-grid-step overhead); fall back to multiples of 8.
            tb = (max_rows // 128) * 128
            if tb == 0:
                tb = (max_rows // 8) * 8
            tb = max(tb, 8)
    else:
        # Clamp/round user-supplied block_rows to a legal (8,128)-rule block.
        tb = max(8, (int(block_rows) // 8) * 8)
        if tb > B:
            tb = B

    grid = (pl.cdiv(B, tb),)

    out2d = pl.pallas_call(
        _se_kernel,
        out_shape=jax.ShapeDtypeStruct((B, CL), x.dtype),
        grid=grid,
        in_specs=[
            pl.BlockSpec((tb, CL), lambda i: (i, 0)),   # x stream (pipelined)
            pl.BlockSpec((CL, Cr), lambda i: (0, 0)),   # constant block: stays
            pl.BlockSpec((Cr, CL), lambda i: (0, 0)),   #   resident across grid
        ],
        out_specs=pl.BlockSpec((tb, CL), lambda i: (i, 0)),
        compiler_params=pltpu.CompilerParams(
            dimension_semantics=("parallel",),
            vmem_limit_bytes=vmem_limit_bytes,
        ),
    )(x2d, w1p, w2e)

    return out2d.reshape(B, C, L)


def se_layer_1d_ref(x, w1, w2):
    """Pure-JAX reference for verification."""
    pooled = jnp.mean(x, axis=-1)                       # (B, C)
    h = jnp.maximum(pooled @ w1.T, 0.0)                 # (B, Cr)
    s = jax.nn.sigmoid(h @ w2.T)                        # (B, C)
    return x * s[:, :, None]


if __name__ == "__main__":
    # Shapes consistent with the module: channel=64, reduction=16 -> Cr=4.
    B, C, L, R = 2, 64, 16, 16
    Cr = C // R

    key = jax.random.PRNGKey(0)
    kx, k1, k2 = jax.random.split(key, 3)

    x = jax.random.normal(kx, (B, C, L), dtype=jnp.float32)
    # Deterministic synthetic weights (Conv1d kernel_size=1, bias=False), squeezed.
    w1 = jax.random.normal(k1, (Cr, C), dtype=jnp.float32) * (1.0 / jnp.sqrt(C))
    w2 = jax.random.normal(k2, (C, Cr), dtype=jnp.float32) * (1.0 / jnp.sqrt(Cr))

    out = jax.block_until_ready(se_layer_1d(x, w1, w2))
    ref = se_layer_1d_ref(x, w1, w2)

    assert out.shape == (B, C, L)
    assert jnp.allclose(out, ref, atol=1e-4, rtol=1e-4), "mismatch vs reference"

    print("KERNEL_OK")
</pallas_src>

<mosaic_0001>
module attributes {stable_mosaic.version = 11 : i64} {
  func.func @_se_kernel(%arg0: i32, %arg1: memref<2x1024xf32, #tpu.memory_space<vmem>>, %arg2: memref<1024x4xf32, #tpu.memory_space<vmem>>, %arg3: memref<4x1024xf32, #tpu.memory_space<vmem>>, %arg4: memref<2x1024xf32, #tpu.memory_space<vmem>>) attributes {dimension_semantics = [#tpu.dimension_semantics<parallel>], iteration_bounds = array<i64: 1>, scalar_prefetch = 0 : i64, scratch_operands = 0 : i64, tpu.core_type = #tpu.core_type<tc>, window_params = [{transform_indices = @transform_0, window_bounds = array<i64: 2, 1024>}, {pipeline_mode = #tpu.pipeline_mode<synchronous>, transform_indices = @transform_1, window_bounds = array<i64: 1024, 4>}, {pipeline_mode = #tpu.pipeline_mode<synchronous>, transform_indices = @transform_2, window_bounds = array<i64: 4, 1024>}, {transform_indices = @transform_3, window_bounds = array<i64: 2, 1024>}]} {
    %c0 = arith.constant 0 : index
    %c0_0 = arith.constant 0 : index
    %0 = vector.load %arg1[%c0, %c0_0] : memref<2x1024xf32, #tpu.memory_space<vmem>>, vector<2x1024xf32>
    %c0_1 = arith.constant 0 : index
    %c0_2 = arith.constant 0 : index
    %1 = vector.load %arg2[%c0_1, %c0_2] : memref<1024x4xf32, #tpu.memory_space<vmem>>, vector<1024x4xf32>
    %cst = arith.constant dense<0.000000e+00> : vector<2x4xf32>
    %2 = tpu.matmul %0, %1, %cst {dimension_numbers = #tpu.dot_dimension_numbers<[1], [0], [0], [1], [0, 0, 1, 1], [], []>} : vector<2x1024xf32>, vector<1024x4xf32>, vector<2x4xf32> -> vector<2x4xf32>
    %cst_3 = arith.constant 0.000000e+00 : f32
    %3 = vector.broadcast %cst_3 : f32 to vector<2x4xf32>
    %4 = arith.maximumf %2, %3 : vector<2x4xf32>
    %c0_4 = arith.constant 0 : index
    %c0_5 = arith.constant 0 : index
    %5 = vector.load %arg3[%c0_4, %c0_5] : memref<4x1024xf32, #tpu.memory_space<vmem>>, vector<4x1024xf32>
    %cst_6 = arith.constant dense<0.000000e+00> : vector<2x1024xf32>
    %6 = tpu.matmul %4, %5, %cst_6 {dimension_numbers = #tpu.dot_dimension_numbers<[1], [0], [0], [1], [0, 0, 1, 1], [], []>} : vector<2x4xf32>, vector<4x1024xf32>, vector<2x1024xf32> -> vector<2x1024xf32>
    %7 = arith.negf %6 : vector<2x1024xf32>
    %8 = math.exp %7 : vector<2x1024xf32>
    %cst_7 = arith.constant 1.000000e+00 : f32
    %9 = vector.broadcast %cst_7 : f32 to vector<2x1024xf32>
    %10 = arith.addf %9, %8 : vector<2x1024xf32>
    %11 = arith.divf %9, %10 : vector<2x1024xf32>
    %12 = arith.mulf %0, %11 : vector<2x1024xf32>
    %c0_8 = arith.constant 0 : index
    %c0_9 = arith.constant 0 : index
    %13 = vector.load %arg4[%c0_8, %c0_9] : memref<2x1024xf32, #tpu.memory_space<vmem>>, vector<2x1024xf32>
    tpu.vector_store %arg4[%c0_8, %c0_9], %12 {strides = array<i32>} : memref<2x1024xf32, #tpu.memory_space<vmem>>, vector<2x1024xf32>,
    return
  }
  func.func @transform_0(%arg0: i32) -> (i32, i32) {
    %c0_i32 = arith.constant 0 : i32
    %c0_i32_0 = arith.constant 0 : i32
    return %arg0, %c0_i32 : i32, i32
  }
  func.func @transform_1(%arg0: i32) -> (i32, i32) {
    %c0_i32 = arith.constant 0 : i32
    %c0_i32_0 = arith.constant 0 : i32
    %c0_i32_1 = arith.constant 0 : i32
    return %c0_i32, %c0_i32_0 : i32, i32
  }
  func.func @transform_2(%arg0: i32) -> (i32, i32) {
    %c0_i32 = arith.constant 0 : i32
    %c0_i32_0 = arith.constant 0 : i32
    %c0_i32_1 = arith.constant 0 : i32
    return %c0_i32, %c0_i32_0 : i32, i32
  }
  func.func @transform_3(%arg0: i32) -> (i32, i32) {
    %c0_i32 = arith.constant 0 : i32
    %c0_i32_0 = arith.constant 0 : i32
    return %arg0, %c0_i32 : i32, i32
  }
}

</mosaic_0001>

<bundles_post_ra>
// kernel: tpu_custom_call.1
= control target key start
LH: loop header
LB: loop body
LE: loop exit
PB: predicated region body
PF: predicated region fallthrough
CT: control target
= control target key end

     0   :  { %v1250_v47 = vmov 1983009808   ;;  %v151_v49 = vlaneseq  ;;  %s1722_s0 = inlined_call_operand.vmem [shape: f32[2,1024], index: 0, kind: input, shape index: {}]   ;;  %s1723_s1 = inlined_call_operand.vmem [shape: f32[1024,4], index: 1, kind: input, shape index: {}]   ;;  %s1724_s2 = inlined_call_operand.vmem [shape: f32[4,1024], index: 2, kind: input, shape index: {}]   ;;  %s1725_s3 = inlined_call_operand.hbm [shape: f32[2,1024], index: 3, kind: output, shape index: {}]  }
   0x1   :  { %v33_v0 = vld [vmem:[%s1723_s1 + $0x80] sm:$0xff]  ;;  %v34_v1 = vld [vmem:[%s1723_s1 + $0x88] sm:$0xff]  ;;  %v35_v11 = vld [vmem:[%s1723_s1 + $0x90] sm:$0xff]  ;;  %v149_v48 = vunpack.c.l.s4 %v1250_v47 }
   0x2   :  { %v65_v2 = vld [vmem:[%s1723_s1 + $0x180] sm:$0xff]  ;;  %v1057_v3 = vpack.c.bf16 %v34_v1, %v33_v0  ;;  %v66_v4 = vld [vmem:[%s1723_s1 + $0x188] sm:$0xff]  ;;  %v36_v13 = vld [vmem:[%s1723_s1 + $0x98] sm:$0xff]  ;;  %v152_v0 = vshrl.u32 %v151_v49, 7 }
   0x3   :  { %v17_v5 = vld [vmem:[%s1723_s1] sm:$0xff]  ;;  %v18_v6 = vld [vmem:[%s1723_s1 + $0x8] sm:$0xff]  ;;  %v1089_v7 = vpack.c.bf16 %v66_v4, %v65_v2  ;;  %v67_v14 = vld [vmem:[%s1723_s1 + $0x190] sm:$0xff]  ;;  %v1061_v16 = vpack.c.bf16 %v36_v13, %v35_v11  ;;  %v150_v63 = vunpack.c.0.s8 %v149_v48 }
   0x4   :  { %v1059_v8 = vpack.c.bf16 %v18_v6, %v17_v5  ;;  %v49_v9 = vld [vmem:[%s1723_s1 + $0x100] sm:$0xff]  ;;  %v50_v10 = vld [vmem:[%s1723_s1 + $0x108] sm:$0xff]  ;;  %1058 = vmatprep.subr.bf16.mxu0 %v1057_v3  ;;  %v68_v15 = vld [vmem:[%s1723_s1 + $0x198] sm:$0xff] }
   0x5   :  { %v1091_v12 = vpack.c.bf16 %v50_v10, %v49_v9  ;;  %1090 = vmatprep.subr.bf16.mxu1 %v1089_v7  ;;  %v1093_v17 = vpack.c.bf16 %v68_v15, %v67_v14  ;;  %v19_v18 = vld [vmem:[%s1723_s1 + $0x10] sm:$0xff]  ;;  %v20_v19 = vld [vmem:[%s1723_s1 + $0x18] sm:$0xff]  ;;  %v37_v23 = vld [vmem:[%s1723_s1 + $0xa0] sm:$0xff]  ;;  %v1423_v13 = vsub.s32 %v150_v63, %v152_v0 }
   0x6   :  { %1060 = vmatpush3.bf16.msra.mxu0 %v1059_v8  ;;  %v51_v20 = vld [vmem:[%s1723_s1 + $0x110] sm:$0xff]  ;;  %v1063_v21 = vpack.c.bf16 %v20_v19, %v19_v18  ;;  %v52_v22 = vld [vmem:[%s1723_s1 + $0x118] sm:$0xff]  ;;  %v38_v24 = vld [vmem:[%s1723_s1 + $0xa8] sm:$0xff] }
   0x7   :  { %1092 = vmatpush3.bf16.msra.mxu1 %v1091_v12  ;;  %1062 = vmatprep.subr.bf16.mxu0 %v1061_v16  ;;  %v1095_v25 = vpack.c.bf16 %v52_v22, %v51_v20  ;;  %v1065_v26 = vpack.c.bf16 %v38_v24, %v37_v23  ;;  %v69_v27 = vld [vmem:[%s1723_s1 + $0x1a0] sm:$0xff]  ;;  %v70_v28 = vld [vmem:[%s1723_s1 + $0x1a8] sm:$0xff]  ;;  %v39_v35 = vld [vmem:[%s1723_s1 + $0xb0] sm:$0xff] }
   0x8   :  { %1094 = vmatprep.subr.bf16.mxu1 %v1093_v17  ;;  %v21_v29 = vld [vmem:[%s1723_s1 + $0x20] sm:$0xff]  ;;  %v1097_v30 = vpack.c.bf16 %v70_v28, %v69_v27  ;;  %v22_v31 = vld [vmem:[%s1723_s1 + $0x28] sm:$0xff]  ;;  %v40_v36 = vld [vmem:[%s1723_s1 + $0xb8] sm:$0xff] }
   0x9   :  { %v53_v32 = vld [vmem:[%s1723_s1 + $0x120] sm:$0xff]  ;;  %v54_v33 = vld [vmem:[%s1723_s1 + $0x128] sm:$0xff]  ;;  %v1067_v34 = vpack.c.bf16 %v22_v31, %v21_v29  ;;  %v71_v37 = vld [vmem:[%s1723_s1 + $0x1b0] sm:$0xff]  ;;  %v1069_v39 = vpack.c.bf16 %v40_v36, %v39_v35 }
   0xa   :  { %1064 = vmatpush3.bf16.msra.mxu0 %v1063_v21  ;;  %v1099_v38 = vpack.c.bf16 %v54_v33, %v53_v32  ;;  %v72_v40 = vld [vmem:[%s1723_s1 + $0x1b8] sm:$0xff]  ;;  %v23_v41 = vld [vmem:[%s1723_s1 + $0x30] sm:$0xff]  ;;  %v41_v46 = vld [vmem:[%s1723_s1 + $0xc0] sm:$0xff] }
   0xb   :  { %1096 = vmatpush3.bf16.msra.mxu1 %v1095_v25  ;;  %1066 = vmatprep.subr.bf16.mxu0 %v1065_v26  ;;  %v24_v42 = vld [vmem:[%s1723_s1 + $0x38] sm:$0xff]  ;;  %v1101_v43 = vpack.c.bf16 %v72_v40, %v71_v37  ;;  %v55_v44 = vld [vmem:[%s1723_s1 + $0x130] sm:$0xff]  ;;  %v42_v50 = vld [vmem:[%s1723_s1 + $0xc8] sm:$0xff] }
   0xc   :  { %1098 = vmatprep.subr.bf16.mxu1 %v1097_v30  ;;  %v56_v45 = vld [vmem:[%s1723_s1 + $0x138] sm:$0xff]  ;;  %v73_v51 = vld [vmem:[%s1723_s1 + $0x1c0] sm:$0xff]  ;;  %v74_v52 = vld [vmem:[%s1723_s1 + $0x1c8] sm:$0xff]  ;;  %v1071_v53 = vpack.c.bf16 %v24_v42, %v23_v41  ;;  %v1073_v55 = vpack.c.bf16 %v42_v50, %v41_v46 }
   0xd   :  { %v1103_v54 = vpack.c.bf16 %v56_v45, %v55_v44  ;;  %v25_v56 = vld [vmem:[%s1723_s1 + $0x40] sm:$0xff]  ;;  %v26_v57 = vld [vmem:[%s1723_s1 + $0x48] sm:$0xff]  ;;  %v1105_v59 = vpack.c.bf16 %v74_v52, %v73_v51  ;;  %v43_v61 = vld [vmem:[%s1723_s1 + $0xd0] sm:$0xff] }
   0xe   :  { %1068 = vmatpush3.bf16.msra.mxu0 %v1067_v34  ;;  %v57_v58 = vld [vmem:[%s1723_s1 + $0x140] sm:$0xff]  ;;  %v58_v60 = vld [vmem:[%s1723_s1 + $0x148] sm:$0xff]  ;;  %v44_v62 = vld [vmem:[%s1723_s1 + $0xd8] sm:$0xff]  ;;  %v1075_v3 = vpack.c.bf16 %v26_v57, %v25_v56 }
   0xf   :  { %1100 = vmatpush3.bf16.msra.mxu1 %v1099_v38  ;;  %1070 = vmatprep.subr.bf16.mxu0 %v1069_v39  ;;  %v75_v1 = vld [vmem:[%s1723_s1 + $0x1d0] sm:$0xff]  ;;  %v76_v2 = vld [vmem:[%s1723_s1 + $0x1d8] sm:$0xff]  ;;  %v1107_v4 = vpack.c.bf16 %v58_v60, %v57_v58  ;;  %v1077_v5 = vpack.c.bf16 %v44_v62, %v43_v61  ;;  %v45_v11 = vld [vmem:[%s1723_s1 + $0xe0] sm:$0xff] }
  0x10   :  { %1102 = vmatprep.subr.bf16.mxu1 %v1101_v43  ;;  %v27_v6 = vld [vmem:[%s1723_s1 + $0x50] sm:$0xff]  ;;  %v28_v7 = vld [vmem:[%s1723_s1 + $0x58] sm:$0xff]  ;;  %v1109_v9 = vpack.c.bf16 %v76_v2, %v75_v1  ;;  %v46_v12 = vld [vmem:[%s1723_s1 + $0xe8] sm:$0xff] }
  0x11   :  { %v59_v8 = vld [vmem:[%s1723_s1 + $0x150] sm:$0xff]  ;;  %v60_v10 = vld [vmem:[%s1723_s1 + $0x158] sm:$0xff]  ;;  %v77_v14 = vld [vmem:[%s1723_s1 + $0x1e0] sm:$0xff]  ;;  %v1079_v16 = vpack.c.bf16 %v28_v7, %v27_v6  ;;  %v1081_v19 = vpack.c.bf16 %v46_v12, %v45_v11 }
  0x12   :  { %1072 = vmatpush3.bf16.msra.mxu0 %v1071_v53  ;;  %v78_v15 = vld [vmem:[%s1723_s1 + $0x1e8] sm:$0xff]  ;;  %v29_v17 = vld [vmem:[%s1723_s1 + $0x60] sm:$0xff]  ;;  %v1111_v18 = vpack.c.bf16 %v60_v10, %v59_v8  ;;  %v47_v25 = vld [vmem:[%s1723_s1 + $0xf0] sm:$0xff] }
  0x13   :  { %1104 = vmatpush3.bf16.msra.mxu1 %v1103_v54  ;;  %1074 = vmatprep.subr.bf16.mxu0 %v1073_v55  ;;  %v30_v20 = vld [vmem:[%s1723_s1 + $0x68] sm:$0xff]  ;;  %v61_v21 = vld [vmem:[%s1723_s1 + $0x160] sm:$0xff]  ;;  %v1113_v23 = vpack.c.bf16 %v78_v15, %v77_v14  ;;  %v48_v26 = vld [vmem:[%s1723_s1 + $0xf8] sm:$0xff] }
  0x14   :  { %1106 = vmatprep.subr.bf16.mxu1 %v1105_v59  ;;  %v1443_v22 = vld [vmem:[%s1722_s0] sm:$0xff]  ;;  %v62_v24 = vld [vmem:[%s1723_s1 + $0x168] sm:$0xff]  ;;  %v79_v29 = vld [vmem:[%s1723_s1 + $0x1f0] sm:$0xff]  ;;  %v1083_v31 = vpack.c.bf16 %v30_v20, %v29_v17  ;;  %v1085_v35 = vpack.c.bf16 %v48_v26, %v47_v25 }
  0x15   :  { %v154_v27 = vrot.slane %v1443_v22, %v1423_v13  ;;  %v147_v28 = vcombine.high %v1443_v22, %v1443_v22  ;;  %v80_v30 = vld [vmem:[%s1723_s1 + $0x1f8] sm:$0xff]  ;;  %v1115_v34 = vpack.c.bf16 %v62_v24, %v61_v21  ;;  %v31_v36 = vld [vmem:[%s1723_s1 + $0x70] sm:$0xff]  ;;  %v97_v42 = vld [vmem:[%s1723_s1 + $0x280] sm:$0xff] }
  0x16   :  { %1076 = vmatpush3.bf16.msra.mxu0 %v1075_v3  ;;  %v32_v37 = vld [vmem:[%s1723_s1 + $0x78] sm:$0xff]  ;;  %v63_v38 = vld [vmem:[%s1723_s1 + $0x170] sm:$0xff]  ;;  %v1117_v39 = vpack.c.bf16 %v80_v30, %v79_v29  ;;  %v98_v43 = vld [vmem:[%s1723_s1 + $0x288] sm:$0xff] }
  0x17   :  { %1108 = vmatpush3.bf16.msra.mxu1 %v1107_v4  ;;  %1078 = vmatprep.subr.bf16.mxu0 %v1077_v5  ;;  %v162_v32 = vcombine.high %v154_v27, %v154_v27  ;;  %v161_v33 = vrot.slane %v147_v28, %v1423_v13  ;;  %v64_v40 = vld [vmem:[%s1723_s1 + $0x178] sm:$0xff]  ;;  %v129_v44 = vld [vmem:[%s1723_s1 + $0x380] sm:$0xff]  ;;  %v130_v45 = vld [vmem:[%s1723_s1 + $0x388] sm:$0xff]  ;;  %v1087_v46 = vpack.c.bf16 %v32_v37, %v31_v36 }
  0x18   :  { %1110 = vmatprep.subr.bf16.mxu1 %v1109_v9  ;;  %v1119_v47 = vpack.c.bf16 %v64_v40, %v63_v38  ;;  %v1121_v48 = vpack.c.bf16 %v98_v43, %v97_v42  ;;  %v81_v49 = vld [vmem:[%s1723_s1 + $0x200] sm:$0xff]  ;;  %v82_v50 = vld [vmem:[%s1723_s1 + $0x208] sm:$0xff]  ;;  %v1153_v52 = vpack.c.bf16 %v130_v45, %v129_v44  ;;  %v99_v54 = vld [vmem:[%s1723_s1 + $0x290] sm:$0xff] }
  0x19   :  { %253 = vmatprep.mubr.f32.mxu0 %v162_v32  ;;  %v163_v41 = vcombine.high %v161_v33, %v161_v33  ;;  %v113_v51 = vld [vmem:[%s1723_s1 + $0x300] sm:$0xff]  ;;  %v114_v53 = vld [vmem:[%s1723_s1 + $0x308] sm:$0xff]  ;;  %v100_v55 = vld [vmem:[%s1723_s1 + $0x298] sm:$0xff]  ;;  %v1123_v58 = vpack.c.bf16 %v82_v50, %v81_v49 }
  0x1a   :  { %1080 = vmatpush3.bf16.msra.mxu0 %v1079_v16  ;;  %v131_v56 = vld [vmem:[%s1723_s1 + $0x390] sm:$0xff]  ;;  %v132_v57 = vld [vmem:[%s1723_s1 + $0x398] sm:$0xff]  ;;  %v1155_v59 = vpack.c.bf16 %v114_v53, %v113_v51  ;;  %v1125_v60 = vpack.c.bf16 %v100_v55, %v99_v54  ;;  %v101_v2 = vld [vmem:[%s1723_s1 + $0x2a0] sm:$0xff] }
  0x1b   :  { %1112 = vmatpush3.bf16.msra.mxu1 %v1111_v18  ;;  %1082 = vmatprep.subr.bf16.mxu0 %v1081_v19  ;;  %v83_v61 = vld [vmem:[%s1723_s1 + $0x210] sm:$0xff]  ;;  %v84_v62 = vld [vmem:[%s1723_s1 + $0x218] sm:$0xff]  ;;  %v1157_v0 = vpack.c.bf16 %v132_v57, %v131_v56  ;;  %v102_v3 = vld [vmem:[%s1723_s1 + $0x2a8] sm:$0xff] }
  0x1c   :  { %1114 = vmatprep.subr.bf16.mxu1 %v1113_v23  ;;  %323 = vmatprep.mubr.f32.mxu1 %v163_v41  ;;  %v115_v63 = vld [vmem:[%s1723_s1 + $0x310] sm:$0xff]  ;;  %v116_v1 = vld [vmem:[%s1723_s1 + $0x318] sm:$0xff]  ;;  %v133_v4 = vld [vmem:[%s1723_s1 + $0x3a0] sm:$0xff]  ;;  %v1127_v6 = vpack.c.bf16 %v84_v62, %v83_v61  ;;  %v1129_v8 = vpack.c.bf16 %v102_v3, %v101_v2 }
  0x1d   :  { %v134_v5 = vld [vmem:[%s1723_s1 + $0x3a8] sm:$0xff]  ;;  %v1159_v7 = vpack.c.bf16 %v116_v1, %v115_v63  ;;  %v85_v9 = vld [vmem:[%s1723_s1 + $0x220] sm:$0xff]  ;;  %v103_v15 = vld [vmem:[%s1723_s1 + $0x2b0] sm:$0xff] }
  0x1e   :  { %1084 = vmatpush3.bf16.msra.mxu0 %v1083_v31  ;;  %v86_v10 = vld [vmem:[%s1723_s1 + $0x228] sm:$0xff]  ;;  %v117_v11 = vld [vmem:[%s1723_s1 + $0x320] sm:$0xff]  ;;  %v1161_v12 = vpack.c.bf16 %v134_v5, %v133_v4  ;;  %v104_v16 = vld [vmem:[%s1723_s1 + $0x2b8] sm:$0xff] }
  0x1f   :  { %1116 = vmatpush3.bf16.msra.mxu1 %v1115_v34  ;;  %1086 = vmatprep.subr.bf16.mxu0 %v1085_v35  ;;  %v118_v14 = vld [vmem:[%s1723_s1 + $0x328] sm:$0xff]  ;;  %v135_v17 = vld [vmem:[%s1723_s1 + $0x3b0] sm:$0xff]  ;;  %v136_v18 = vld [vmem:[%s1723_s1 + $0x3b8] sm:$0xff]  ;;  %v1131_v19 = vpack.c.bf16 %v86_v10, %v85_v9  ;;  %v1133_v23 = vpack.c.bf16 %v104_v16, %v103_v15 }
  0x20   :  { %1118 = vmatprep.subr.bf16.mxu1 %v1117_v39  ;;  %v87_v20 = vld [vmem:[%s1723_s1 + $0x230] sm:$0xff]  ;;  %v1163_v21 = vpack.c.bf16 %v118_v14, %v117_v11  ;;  %v88_v24 = vld [vmem:[%s1723_s1 + $0x238] sm:$0xff]  ;;  %v105_v28 = vld [vmem:[%s1723_s1 + $0x2c0] sm:$0xff] }
  0x21   :  { %v119_v25 = vld [vmem:[%s1723_s1 + $0x330] sm:$0xff]  ;;  %v120_v26 = vld [vmem:[%s1723_s1 + $0x338] sm:$0xff]  ;;  %v106_v29 = vld [vmem:[%s1723_s1 + $0x2c8] sm:$0xff] }
  0x22   :  { %1088 = vmatpush3.bf16.msra.mxu0 %v1087_v46  ;;  %v137_v30 = vld [vmem:[%s1723_s1 + $0x3c0] sm:$0xff]  ;;  %v138_v31 = vld [vmem:[%s1723_s1 + $0x3c8] sm:$0xff] }
  0x23   :  { %1120 = vmatpush3.bf16.msra.mxu1 %v1119_v47  ;;  %1122 = vmatprep.subr.bf16.mxu0 %v1121_v48  ;;  %v1588_v32 = vld [vmem:[%s1722_s0 + $0x8] sm:$0xff] }
  0x24   :  { %1154 = vmatprep.subr.bf16.mxu1 %v1153_v52 }
  0x25   :  { %254 = vmatmul.mubr.f32.vlgmr.msra.gmra.mrb[0].mxu0 %v154_v27  ;;  %v1165_v27 = vpack.c.bf16 %v136_v18, %v135_v17 }
  0x26   :  { %324 = vmatmul.mubr.f32.vlgmr.msra.gmra.mrb[0].mxu1 %v161_v33  ;;  %1124 = vmatpush3.bf16.msra.mxu0 %v1123_v58 }
  0x27   :  { %1156 = vmatpush3.bf16.msra.mxu1 %v1155_v59  ;;  %1126 = vmatprep.subr.bf16.mxu0 %v1125_v60 }
  0x28   :  { %1158 = vmatprep.subr.bf16.mxu1 %v1157_v0 }
  0x2a   :  { %1128 = vmatpush3.bf16.msra.mxu0 %v1127_v6 }
  0x2b   :  { %1160 = vmatpush3.bf16.msra.mxu1 %v1159_v7  ;;  %1130 = vmatprep.subr.bf16.mxu0 %v1129_v8 }
  0x2c   :  { %1162 = vmatprep.subr.bf16.mxu1 %v1161_v12 }
  0x2d   :  { %8 = vsyncpa [#allocation3], 0  ;;  %v1135_v33 = vpack.c.bf16 %v88_v24, %v87_v20  ;;  %v1592_v34 = vrot.slane %v1588_v32, %v1423_v13  ;;  %v164_v35 = vcombine.high %v1588_v32, %v1588_v32  ;;  %v1167_v36 = vpack.c.bf16 %v120_v26, %v119_v25  ;;  %v89_v38 = vld [vmem:[%s1723_s1 + $0x240] sm:$0xff]  ;;  %v90_v39 = vld [vmem:[%s1723_s1 + $0x248] sm:$0xff] }
  0x2e   :  { %1132 = vmatpush3.bf16.msra.mxu0 %v1131_v19  ;;  %v1137_v37 = vpack.c.bf16 %v106_v29, %v105_v28  ;;  %v121_v40 = vld [vmem:[%s1723_s1 + $0x340] sm:$0xff]  ;;  %v1169_v41 = vpack.c.bf16 %v138_v31, %v137_v30  ;;  %v122_v42 = vld [vmem:[%s1723_s1 + $0x348] sm:$0xff]  ;;  %v107_v43 = vld [vmem:[%s1723_s1 + $0x2d0] sm:$0xff]  ;;  %v1139_v49 = vpack.c.bf16 %v90_v39, %v89_v38  ;;  %vm486_vm0 = vcmask 1043456  }
  0x2f   :  { %1164 = vmatpush3.bf16.msra.mxu1 %v1163_v21  ;;  %1134 = vmatprep.subr.bf16.mxu0 %v1133_v23  ;;  %v108_v44 = vld [vmem:[%s1723_s1 + $0x2d8] sm:$0xff]  ;;  %v179_v45 = vcombine.high %v1592_v34, %v1592_v34  ;;  %v178_v46 = vrot.slane %v164_v35, %v1423_v13  ;;  %v139_v47 = vld [vmem:[%s1723_s1 + $0x3d0] sm:$0xff]  ;;  %v1171_v51 = vpack.c.bf16 %v122_v42, %v121_v40  ;;  %v109_v58 = vld [vmem:[%s1723_s1 + $0x2e0] sm:$0xff]  ;;  %v1251_v30 = vmov 0.0  }
  0x30   :  { %1166 = vmatprep.subr.bf16.mxu1 %v1165_v27  ;;  %v140_v48 = vld [vmem:[%s1723_s1 + $0x3d8] sm:$0xff]  ;;  %v1141_v52 = vpack.c.bf16 %v108_v44, %v107_v43  ;;  %v91_v53 = vld [vmem:[%s1723_s1 + $0x250] sm:$0xff]  ;;  %v110_v59 = vld [vmem:[%s1723_s1 + $0x2e8] sm:$0xff]  ;;  %vm482_vm1 = vcmask 31744  }
  0x31   :  { %393 = vmatprep.mubr.f32.mxu0 %v179_v45  ;;  %v180_v50 = vcombine.high %v178_v46, %v178_v46  ;;  %v92_v54 = vld [vmem:[%s1723_s1 + $0x258] sm:$0xff]  ;;  %v123_v55 = vld [vmem:[%s1723_s1 + $0x350] sm:$0xff]  ;;  %v1173_v56 = vpack.c.bf16 %v140_v48, %v139_v47  ;;  %v141_v60 = vld [vmem:[%s1723_s1 + $0x3e0] sm:$0xff]  ;;  %v1145_v0 = vpack.c.bf16 %v110_v59, %v109_v58 }
  0x32   :  { %1136 = vmatpush3.bf16.msra.mxu0 %v1135_v33  ;;  %v124_v57 = vld [vmem:[%s1723_s1 + $0x358] sm:$0xff]  ;;  %v142_v61 = vld [vmem:[%s1723_s1 + $0x3e8] sm:$0xff]  ;;  %v1143_v62 = vpack.c.bf16 %v92_v54, %v91_v53  ;;  %v93_v1 = vld [vmem:[%s1723_s1 + $0x260] sm:$0xff] }
  0x33   :  { %1168 = vmatpush3.bf16.msra.mxu1 %v1167_v36  ;;  %1138 = vmatprep.subr.bf16.mxu0 %v1137_v37  ;;  %v1175_v63 = vpack.c.bf16 %v124_v57, %v123_v55  ;;  %v94_v2 = vld [vmem:[%s1723_s1 + $0x268] sm:$0xff]  ;;  %v125_v3 = vld [vmem:[%s1723_s1 + $0x360] sm:$0xff]  ;;  %v1177_v4 = vpack.c.bf16 %v142_v61, %v141_v60  ;;  %v111_v6 = vld [vmem:[%s1723_s1 + $0x2f0] sm:$0xff] }
  0x34   :  { %1170 = vmatprep.subr.bf16.mxu1 %v1169_v41  ;;  %463 = vmatprep.mubr.f32.mxu1 %v180_v50  ;;  %v126_v5 = vld [vmem:[%s1723_s1 + $0x368] sm:$0xff]  ;;  %v112_v7 = vld [vmem:[%s1723_s1 + $0x2f8] sm:$0xff]  ;;  %v143_v8 = vld [vmem:[%s1723_s1 + $0x3f0] sm:$0xff]  ;;  %v1147_v10 = vpack.c.bf16 %v94_v2, %v93_v1 }
  0x35   :  { %v144_v9 = vld [vmem:[%s1723_s1 + $0x3f8] sm:$0xff]  ;;  %v1179_v11 = vpack.c.bf16 %v126_v5, %v125_v3  ;;  %v1149_v12 = vpack.c.bf16 %v112_v7, %v111_v6  ;;  %v95_v14 = vld [vmem:[%s1723_s1 + $0x270] sm:$0xff]  ;;  %v470_v21 = vld [vmem:[%s1724_s2] sm:$0xff] }
  0x36   :  { %1140 = vmatpush3.bf16.msra.mxu0 %v1139_v49  ;;  %v96_v15 = vld [vmem:[%s1723_s1 + $0x278] sm:$0xff]  ;;  %v1181_v16 = vpack.c.bf16 %v144_v9, %v143_v8  ;;  %v127_v17 = vld [vmem:[%s1723_s1 + $0x370] sm:$0xff]  ;;  %v471_v23 = vld [vmem:[%s1724_s2 + $0x8] sm:$0xff]  ;;  %v478_v24 = vcombine.high %v470_v21, %v470_v21 }
  0x37   :  { %1172 = vmatpush3.bf16.msra.mxu1 %v1171_v51  ;;  %1142 = vmatprep.subr.bf16.mxu0 %v1141_v52  ;;  %v128_v18 = vld [vmem:[%s1723_s1 + $0x378] sm:$0xff]  ;;  %v1151_v19 = vpack.c.bf16 %v96_v15, %v95_v14  ;;  %v479_v25 = vcombine.high %v471_v23, %v471_v23  ;;  %v472_v26 = vld [vmem:[%s1724_s2 + $0x10] sm:$0xff] }
  0x38   :  { %1174 = vmatprep.subr.bf16.mxu1 %v1173_v56  ;;  %v1183_v20 = vpack.c.bf16 %v128_v18, %v127_v17  ;;  %v473_v27 = vld [vmem:[%s1724_s2 + $0x18] sm:$0xff]  ;;  %v480_v28 = vcombine.high %v472_v26, %v472_v26  ;;  %s1252_s2 = smov [#allocation2]  }
  0x39   :  { %v481_v29 = vcombine.high %v473_v27, %v473_v27  ;;  %s889_s6 = sshll.u32 %s1252_s2, 4  ;;  %s890_s6 = int_to_ptr.vmem [resolvable:$true] %s889_s6 }
  0x3a   :  { %1144 = vmatpush3.bf16.msra.mxu0 %v1143_v62  ;;  %s1226_s7 = scalar_lea.vmem %s890_s6, 256  ;;  %p1231_p1 = scmp.lt.s32.totalorder %s890_s6, %s890_s6 }
  0x3b   :  { %1176 = vmatpush3.bf16.msra.mxu1 %v1175_v63  ;;  %1146 = vmatprep.subr.bf16.mxu0 %v1145_v0  ;;  %p1227_p0 = scmp.ne.s32.totalorder %s890_s6, %s1226_s7  ;;  %p1232_p2 = scmp.lt.s32.totalorder %s1226_s7, %s1226_s7 }
  0x3c   :  { %1178 = vmatprep.subr.bf16.mxu1 %v1177_v4 }
  0x3d   :  { %p1233_p3 = por %p1232_p2, %p1231_p1 }
  0x3e   :  { %1148 = vmatpush3.bf16.msra.mxu0 %v1147_v10 }
  0x3f   :  { %1180 = vmatpush3.bf16.msra.mxu1 %v1179_v11  ;;  %1150 = vmatprep.subr.bf16.mxu0 %v1149_v12  ;;  %p1234_p4 = pnand %p1233_p3, %p1227_p0 }
  0x40   :  { %1182 = vmatprep.subr.bf16.mxu1 %v1181_v16 }
  0x42   :  { %1152 = vmatpush3.bf16.msra.mxu0 %v1151_v19 }
  0x43   :  { %1184 = vmatpush3.bf16.msra.mxu1 %v1183_v20  ;;  %897 = vmatprep.subr.msk.mxu0 %vm486_vm0, %v478_v24 }
  0x44   :  { %900 = vmatprep.subr.msk.mxu1 %vm486_vm0, %v479_v25 }
  0x45   :  { %394 = vmatmul.mubr.f32.vlgmr.msra.gmra.mrb[2].mxu0 %v1592_v34 }
  0x46   :  { %464 = vmatmul.mubr.f32.vlgmr.msra.gmra.mrb[2].mxu1 %v178_v46  ;;  %898 = vmatpush1.msk.msra.mxu0 %vm486_vm0, %v470_v21 }
  0x47   :  { %901 = vmatpush1.msk.msra.mxu1 %vm486_vm0, %v471_v23  ;;  %567 = vmatprep.mubr.f32.mxu0 %v1251_v30 }
  0x48   :  { %638 = vmatprep.mubr.f32.mxu1 %v1251_v30  ;;  %903 = vmatprep.subr.msk.mxu0 %vm486_vm0, %v480_v28 }
  0x49   :  { %906 = vmatprep.subr.msk.mxu1 %vm486_vm0, %v481_v29 }
  0xf8   :  { %v949_v31 = vpop.f32.mrb[0].mxu0 }
  0xf9   :  { %v984_v33 = vpop.f32.mrb[0].mxu1  ;;  %v950_v34 = vpop.f32.mrb[1].mxu0 }
  0xfa   :  { %v951_v35 = vadd.f32 %v950_v34, %v949_v31  ;;  %v985_v36 = vpop.f32.mrb[1].mxu1 }
  0xfb   :  { %v986_v37 = vadd.f32 %v985_v36, %v984_v33 }
  0xfd   :  { %v326_v38 = vadd.f32 %v986_v37, %v951_v35 }
 0x118   :  { %v1019_v39 = vpop.f32.mrb[2].mxu0 }
 0x119   :  { %v1020_v40 = vpop.f32.mrb[3].mxu0  ;;  %v1054_v41 = vpop.f32.mrb[2].mxu1 }
 0x11a   :  { %v1021_v42 = vadd.f32 %v1020_v40, %v1019_v39  ;;  %v1055_v43 = vpop.f32.mrb[3].mxu1 }
 0x11b   :  { %v1056_v44 = vadd.f32 %v1055_v43, %v1054_v41 }
 0x11c   :  { %v396_v45 = vadd.f32 %v1021_v42, %v326_v38 }
 0x11e   :  { %v466_v46 = vadd.f32 %v1056_v44, %v396_v45 }
 0x120   :  { %v469_v47 = vmax.f32 %v466_v46, 0.0 }
 0x122   :  { %899 = vmatmul.mubr.msk.f32.vlgmr.msra.gmra.mrb[4].mxu0 %vm482_vm1, %v469_v47  ;;  %902 = vmatmul.mubr.msk.f32.vlgmr.msra.gmra.mrb[4].mxu1 %vm482_vm1, %v469_v47 }
 0x123   :  { %904 = vmatpush1.msk.msra.mxu0 %vm486_vm0, %v472_v26  ;;  %907 = vmatpush1.msk.msra.mxu1 %vm486_vm0, %v473_v27 }
 0x124   :  { %709 = vmatprep.mubr.f32.mxu0 %v1251_v30  ;;  %780 = vmatprep.mubr.f32.mxu1 %v1251_v30 }
 0x126   :  { %905 = vmatmul.mubr.msk.f32.vlgmr.msra.gmra.mrb[6].mxu0 %vm482_vm1, %v469_v47  ;;  %908 = vmatmul.mubr.msk.f32.vlgmr.msra.gmra.mrb[6].mxu1 %vm482_vm1, %v469_v47 }
 0x1f5   :  { %v569_v48 = vpop.f32.mrb[4].mxu0  ;;  %v640_v49 = vpop.f32.mrb[4].mxu1 }
 0x1f6   :  { %v909_v50 = vmul.f32 -1.442695, %v569_v48  ;;  %v911_v51 = vmul.f32 -1.442695, %v640_v49  ;;  %v571_v52 = vpop.f32.mrb[5].mxu0  ;;  %v642_v53 = vpop.f32.mrb[5].mxu1 }
 0x1f7   :  { %v910_v54 = vmul.f32 -1.442695, %v571_v52  ;;  %v912_v55 = vmul.f32 -1.442695, %v642_v53 }
 0x1f8   :  { %1194 = vpow2.f32 %v909_v50 }
 0x1f9   :  { %1196 = vpow2.f32 %v911_v51  ;;  %v711_v56 = vpop.f32.mrb[6].mxu0  ;;  %v782_v57 = vpop.f32.mrb[6].mxu1 }
 0x1fa   :  { %1198 = vpow2.f32 %v910_v54  ;;  %v913_v58 = vmul.f32 -1.442695, %v711_v56  ;;  %v915_v59 = vmul.f32 -1.442695, %v782_v57  ;;  %v713_v60 = vpop.f32.mrb[7].mxu0  ;;  %v784_v61 = vpop.f32.mrb[7].mxu1 }
 0x1fb   :  { %1200 = vpow2.f32 %v912_v55  ;;  %v914_v62 = vmul.f32 -1.442695, %v713_v60  ;;  %v916_v63 = vmul.f32 -1.442695, %v784_v61 }
 0x1fc   :  { %1202 = vpow2.f32 %v913_v58 }
 0x1fd   :  { %1204 = vpow2.f32 %v915_v59 }
 0x1fe   :  { %1206 = vpow2.f32 %v914_v62 }
 0x1ff   :  { %1208 = vpow2.f32 %v916_v63 }
 0x202   :  { %v1195_v0 = vpop.eup %1194 }
 0x203   :  { %v1197_v1 = vpop.eup %1196  ;;  %v811_v2 = vadd.f32 1.0, %v1195_v0 }
 0x204   :  { %v1199_v3 = vpop.eup %1198  ;;  %v813_v4 = vadd.f32 1.0, %v1197_v1 }
 0x205   :  { %v1201_v5 = vpop.eup %1200  ;;  %1210 = vrcp.f32 %v811_v2  ;;  %v812_v6 = vadd.f32 1.0, %v1199_v3 }
 0x206   :  { %v1203_v7 = vpop.eup %1202  ;;  %1212 = vrcp.f32 %v813_v4  ;;  %v814_v8 = vadd.f32 1.0, %v1201_v5 }
 0x207   :  { %v1205_v9 = vpop.eup %1204  ;;  %1214 = vrcp.f32 %v812_v6  ;;  %v815_v10 = vadd.f32 1.0, %v1203_v7 }
 0x208   :  { %v1207_v11 = vpop.eup %1206  ;;  %1216 = vrcp.f32 %v814_v8  ;;  %v817_v12 = vadd.f32 1.0, %v1205_v9 }
 0x209   :  { %v1209_v14 = vpop.eup %1208  ;;  %1218 = vrcp.f32 %v815_v10  ;;  %v816_v15 = vadd.f32 1.0, %v1207_v11 }
 0x20a   :  { %1220 = vrcp.f32 %v817_v12  ;;  %v818_v16 = vadd.f32 1.0, %v1209_v14 }
 0x20b   :  { %1222 = vrcp.f32 %v816_v15 }
 0x20c   :  { %1224 = vrcp.f32 %v818_v16 }
 0x20f   :  { %v1211_v17 = vpop.eup %1210 }
 0x210   :  { %v1213_v18 = vpop.eup %1212 }
 0x211   :  { %v1215_v19 = vpop.eup %1214 }
 0x212   :  { %v1217_v20 = vpop.eup %1216  ;;  %v843_v21 = vcombine.low %v1211_v17, %v1215_v19 }
 0x213   :  { %v1219_v23 = vpop.eup %1218  ;;  %v844_v24 = vcombine.low %v1213_v18, %v1217_v20 }
 0x214   :  { %v1221_v25 = vpop.eup %1220  ;;  %v851_v26 = vrot.slane %v843_v21, %v1423_v13 }
 0x215   :  { %v1223_v27 = vpop.eup %1222  ;;  %v858_v28 = vrot.slane %v844_v24, %v1423_v13 }
 0x216   :  { %v1225_v29 = vpop.eup %1224  ;;  %v860_v30 = vcombine.low %v1219_v23, %v1223_v27 }
 0x217   :  { %v859_v31 = vcombine.low %v851_v26, %v858_v28  ;;  %v861_v33 = vcombine.low %v1221_v25, %v1225_v29 }
 0x218   :  { %v868_v34 = vrot.slane %v860_v30, %v1423_v13 }
 0x219   :  { %v875_v35 = vrot.slane %v861_v33, %v1423_v13  ;;  %v879_v36 = vmul.f32 %v859_v31, %v1443_v22 }
 0x21b   :  { %v876_v37 = vcombine.low %v868_v34, %v875_v35  ;;  %881 = vst [vmem:[#allocation2] sm:$0xff] %v879_v36 }
 0x21d   :  { %v880_v38 = vmul.f32 %v876_v37, %v1588_v32 }
 0x21f   :  { %882 = vst [vmem:[#allocation2 + $0x8] sm:$0xff] %v880_v38 }
 0x220   :  { %1237 = shalt.err (!%p1234_p4)
}
 0x221   :  { %s1238_s10 = scalar_lea.hbm %s1725_s3, 256 }
 0x222   :  { %p1239_p5 = scmp.ne.s32.totalorder %s1725_s3, %s1238_s10  ;;  %p1242_p6 = scmp.lt.u32.totalorder %s1238_s10, %s1725_s3 }
 0x224   :  { %p1244_p7 = pnand %p1242_p6, %p1239_p5 }
 0x226   :  { %1247 = shalt.err (!%p1244_p7)
}
 0x227   :  { %892 = dma.vmem_to_hbm [thread:$0]  %s890_s6, 256, %s1725_s3, [#allocation3]  }
 0x228   :  { %1248 = dma.done.wait [#allocation3], 256  }
 0x229   :  { %1249 = vsyncadd [#allocation3], 4294967040 }
 0x22a   :  { %896 = vsyncpa [#allocation3], 1 }

</bundles_post_ra>
